<compile_context>
chip_gen: v6e
topology: v6e:2x2x1
jax: 0.10.0
libtpu: 0.0.40
codegen_flags: <defaults>
</compile_context>

<pallas_src>
import functools

import jax
import jax.numpy as jnp
from jax.experimental import pallas as pl
from jax.experimental.pallas import tpu as pltpu


def _pick_tile_h(H, W):
    """Row-tile height: divides H, gives lane-aligned (128-multiple) tiles."""
    cands = [th for th in range(1, H + 1)
             if H % th == 0 and (th * W) % 128 == 0]
    if not cands:
        return H                                  # fall back to a single tile
    multi = [th for th in cands if th < H] or cands
    # target ~1024 output lanes per step (amortize ~0.35us per-step overhead)
    return min(multi, key=lambda th: abs(th * W - 1024))


def _bottleneck_kernel(x_ref, cmask_ref, w_red_ref, w_main_ref, w_inc_ref,
                       par_ref, out_ref, mid_ref, *, M, K, P, H, W, TW):
    f32 = jnp.float32
    HW = H * W
    S = P * W + P                  # zero-slack lanes on each side of r
    i = pl.program_id(1)

    b_r = par_ref[0:M, 0:1]
    a_r = par_ref[0:M, 1:2]
    b_m = par_ref[0:M, 2:3]
    a_m = par_ref[0:M, 3:4]
    b_i = par_ref[:, 4:5]
    a_i = par_ref[:, 5:6]
    a_f = par_ref[:, 6:7]

    # ---- once per image: 1x1 reduce + fused KxK conv over the whole image,
    #      cached in VMEM scratch for the row-tile steps of this image -------
    @pl.when(i == 0)
    def _():
        x_img = x_ref[...]                                               # (C, HW)
        r = jnp.dot(w_red_ref[...], x_img, preferred_element_type=f32)   # (M, HW)
        r = r + b_r
        r = jnp.where(r > 0, r, a_r * r)

        # zero-slack frame: row-halo reads land in the zero slack, column-halo
        # reads are killed by the per-dx mask -> exact zero padding of r.
        zpad = jnp.zeros((M, S), f32)
        r_pad = jnp.concatenate([zpad, r, zpad], axis=1)                 # (M, HW+2S)

        taps = []
        for ky in range(K):
            for kx in range(K):
                s = (ky - P) * W + (kx - P)
                taps.append(r_pad[:, S + s:S + s + HW]
                            * cmask_ref[kx:kx + 1, :])
        im2col = jnp.concatenate(taps, axis=0)                           # (K*K*M, HW)

        mid = jnp.dot(w_main_ref[...], im2col,
                      preferred_element_type=f32)                        # (M, HW)
        mid = mid + b_m
        mid_ref[...] = jnp.where(mid > 0, mid, a_m * mid)

    # ---- per row-tile: 1x1 increase + residual + final PReLU ---------------
    lane0 = pl.multiple_of(i * TW, TW)
    mid_t = mid_ref[:, pl.ds(lane0, TW)]                                 # (M, TW)
    v = jnp.dot(w_inc_ref[...], mid_t, preferred_element_type=f32)       # (C, TW)
    v = v + b_i
    v = jnp.where(v > 0, v, a_i * v)

    # TODO(synk): Dropout2d is identity (eval mode); training-mode NYI.
    x_t = x_ref[:, pl.ds(lane0, TW)]                                     # (C, TW)
    o = x_t + v
    o = jnp.where(o > 0, o, a_f * o)
    out_ref[...] = o.astype(out_ref.dtype)


def bottleneck_unit(x_nchw, w_red, aff_r, w_main, aff_m, w_inc, aff_i, alpha_f):
    """x_nchw: (N, C, H, W) float32.  Returns (N, C, H, W)."""
    N, C, H, W = x_nchw.shape
    M = w_red.shape[1]
    K = w_main.shape[0]
    P = (K - 1) // 2
    HW = H * W
    KKM = K * K * M
    f32 = jnp.float32

    TH = _pick_tile_h(H, W)
    TW = TH * W
    n_tiles = H // TH

    # ---- fold BatchNorm scales into the conv weights (tiny, one-time) ------
    s_r, b_r, a_r = aff_r[0], aff_r[1], aff_r[2]
    s_m, b_m, a_m = aff_m[0], aff_m[1], aff_m[2]
    s_i, b_i, a_i = aff_i[0], aff_i[1], aff_i[2]

    w_red_t = (w_red.T * s_r[:, None]).astype(f32)                       # (M, C)
    w_main_t = (jnp.transpose(w_main, (3, 0, 1, 2))                      # (Mo,K,K,Mi)
                * s_m[:, None, None, None]).reshape(M, KKM).astype(f32)  # (M, K*K*M)
    w_inc_t = (w_inc.T * s_i[:, None]).astype(f32)                       # (C, M)

    # pack all per-channel biases / PReLU alphas into one (C, 8) slab
    def _padc(v):
        return jnp.pad(v, (0, C - v.shape[0]))
    params = jnp.stack([_padc(b_r), _padc(a_r), _padc(b_m), _padc(a_m),
                        b_i, a_i, alpha_f, jnp.zeros((C,), f32)],
                       axis=1).astype(f32)                               # (C, 8)

    # per-dx column-validity mask in the flat (q = y*W + x) lane frame
    xs = jnp.arange(W)
    cmask = jnp.stack(
        [jnp.tile(((xs + (kx - P) >= 0) & (xs + (kx - P) < W)).astype(f32), H)
         for kx in range(K)])                                            # (K, HW)

    # contiguous reshape only — no pad, no extra HBM pass over activations
    x_flat = x_nchw.reshape(N, C, HW).astype(f32)

    kernel = functools.partial(_bottleneck_kernel,
                               M=M, K=K, P=P, H=H, W=W, TW=TW)

    est_bytes = 4 * (2 * C * HW + 2 * K * HW + 2 * C * TW + M * HW
                     + M * C + M * KKM + C * M + C * 8) + (1 << 20)
    vmem_limit = int(min(max(32 * 1024 * 1024, 2 * est_bytes),
                         64 * 1024 * 1024))

    out_flat = pl.pallas_call(
        kernel,
        out_shape=jax.ShapeDtypeStruct((N, C, HW), x_nchw.dtype),
        grid_spec=pltpu.PrefetchScalarGridSpec(
            num_scalar_prefetch=0,
            grid=(N, n_tiles),
            in_specs=[
                pl.BlockSpec((None, C, HW), lambda n, i: (n, 0, 0)),  # x (per image)
                pl.BlockSpec((K, HW), lambda n, i: (0, 0)),           # col masks
                pl.BlockSpec((M, C), lambda n, i: (0, 0)),            # w_reduce
                pl.BlockSpec((M, KKM), lambda n, i: (0, 0)),          # w_main (flat)
                pl.BlockSpec((C, M), lambda n, i: (0, 0)),            # w_increase
                pl.BlockSpec((C, 8), lambda n, i: (0, 0)),            # packed params
            ],
            out_specs=pl.BlockSpec((None, C, TW), lambda n, i: (n, 0, i)),
            scratch_shapes=[pltpu.VMEM((M, HW), f32)],                # mid (per image)
        ),
        compiler_params=pltpu.CompilerParams(
            dimension_semantics=("parallel", "arbitrary"),
            vmem_limit_bytes=vmem_limit,
        ),
    )(x_flat, cmask, w_red_t, w_main_t, w_inc_t, params)

    return out_flat.reshape(N, C, H, W)


def ref_forward(x_nchw, w_red, aff_r, w_main, aff_m, w_inc, aff_i, alpha_f):
    """Pure-JAX reference (NCHW in/out), BN passed as un-folded (scale, bias)."""
    K = w_main.shape[0]
    P = (K - 1) // 2

    def bn_prelu(y, aff):
        s, b, a = aff[0], aff[1], aff[2]
        y = y * s + b
        return jnp.where(y > 0, y, a * y)

    x = jnp.transpose(x_nchw, (0, 2, 3, 1))                      # NHWC
    r = jnp.einsum('nhwc,cm->nhwm', x, w_red)
    r = bn_prelu(r, aff_r)
    m = jax.lax.conv_general_dilated(
        r, w_main, window_strides=(1, 1), padding=((P, P), (P, P)),
        dimension_numbers=('NHWC', 'HWIO', 'NHWC'))
    m = bn_prelu(m, aff_m)
    v = jnp.einsum('nhwm,mc->nhwc', m, w_inc)
    v = bn_prelu(v, aff_i)
    o = x + v
    o = jnp.where(o > 0, o, alpha_f * o)
    return jnp.transpose(o, (0, 3, 1, 2))                        # back to NCHW


def make_affine(key, ch):
    """Random BatchNorm params folded to (scale, bias), plus PReLU alpha."""
    k1, k2, k3, k4, k5 = jax.random.split(key, 5)
    gamma = 1.0 + 0.1 * jax.random.normal(k1, (ch,))
    beta = 0.1 * jax.random.normal(k2, (ch,))
    mean = 0.1 * jax.random.normal(k3, (ch,))
    var = jax.nn.softplus(jax.random.normal(k4, (ch,))) + 0.5
    alpha = 0.25 + 0.05 * jax.random.normal(k5, (ch,))
    scale = gamma / jnp.sqrt(var + 1e-5)
    bias = beta - mean * scale
    return jnp.stack([scale, bias, alpha]).astype(jnp.float32)   # (3, ch)


if __name__ == "__main__":
    # BottleneckUnit(in_channels=16, kernel_size=3, stride=1, padding=1)
    N, C, H, W = 2, 16, 16, 16
    M = C // 4          # projection_ratio = 4
    K = 3

    key = jax.random.PRNGKey(0)
    keys = jax.random.split(key, 8)

    w_red = (0.2 * jax.random.normal(keys[0], (C, M))).astype(jnp.float32)         # 1x1 reduce (C->M)
    w_main = (0.2 * jax.random.normal(keys[1], (K, K, M, M))).astype(jnp.float32)  # KxK conv, HWIO
    w_inc = (0.2 * jax.random.normal(keys[2], (M, C))).astype(jnp.float32)         # 1x1 increase (M->C)
    aff_r = make_affine(keys[3], M)
    aff_m = make_affine(keys[4], M)
    aff_i = make_affine(keys[5], C)
    alpha_f = (0.25 + 0.05 * jax.random.normal(keys[6], (C,))).astype(jnp.float32)

    x = jax.random.normal(keys[7], (N, C, H, W), jnp.float32)     # PyTorch NCHW layout

    out = bottleneck_unit(x, w_red, aff_r, w_main, aff_m, w_inc, aff_i, alpha_f)
    out = jax.block_until_ready(out)

    ref = ref_forward(x, w_red, aff_r, w_main, aff_m, w_inc, aff_i, alpha_f)
    assert out.shape == (N, C, H, W)
    err = float(jnp.max(jnp.abs(out - ref)))
    assert jnp.allclose(out, ref, rtol=1e-4, atol=1e-4), err

    print("KERNEL_OK")
</pallas_src>

<mosaic_0001>
module attributes {stable_mosaic.version = 11 : i64} {
  func.func @_bottleneck_kernel(%arg0: i32, %arg1: i32, %arg2: memref<1x16x256xf32, #tpu.memory_space<vmem>>, %arg3: memref<3x256xf32, #tpu.memory_space<vmem>>, %arg4: memref<4x16xf32, #tpu.memory_space<vmem>>, %arg5: memref<4x36xf32, #tpu.memory_space<vmem>>, %arg6: memref<16x4xf32, #tpu.memory_space<vmem>>, %arg7: memref<16x8xf32, #tpu.memory_space<vmem>>, %arg8: memref<1x16x128xf32, #tpu.memory_space<vmem>>, %arg9: memref<4x256xf32, #tpu.memory_space<vmem>>) attributes {dimension_semantics = [#tpu.dimension_semantics<parallel>, #tpu.dimension_semantics<arbitrary>], iteration_bounds = array<i64: 2, 2>, scalar_prefetch = 0 : i64, scratch_operands = 1 : i64, tpu.core_type = #tpu.core_type<tc>, window_params = [{transform_indices = @transform_0, window_bounds = array<i64: 1, 16, 256>}, {pipeline_mode = #tpu.pipeline_mode<synchronous>, transform_indices = @transform_1, window_bounds = array<i64: 3, 256>}, {pipeline_mode = #tpu.pipeline_mode<synchronous>, transform_indices = @transform_2, window_bounds = array<i64: 4, 16>}, {pipeline_mode = #tpu.pipeline_mode<synchronous>, transform_indices = @transform_3, window_bounds = array<i64: 4, 36>}, {pipeline_mode = #tpu.pipeline_mode<synchronous>, transform_indices = @transform_4, window_bounds = array<i64: 16, 4>}, {pipeline_mode = #tpu.pipeline_mode<synchronous>, transform_indices = @transform_5, window_bounds = array<i64: 16, 8>}, {transform_indices = @transform_6, window_bounds = array<i64: 1, 16, 128>}]} {
    %c0 = arith.constant 0 : index
    %c0_0 = arith.constant 0 : index
    %0 = vector.load %arg7[%c0, %c0_0] : memref<16x8xf32, #tpu.memory_space<vmem>>, vector<4x1xf32>
    %c0_1 = arith.constant 0 : index
    %c1 = arith.constant 1 : index
    %1 = vector.load %arg7[%c0_1, %c1] : memref<16x8xf32, #tpu.memory_space<vmem>>, vector<4x1xf32>
    %c0_2 = arith.constant 0 : index
    %c2 = arith.constant 2 : index
    %2 = vector.load %arg7[%c0_2, %c2] : memref<16x8xf32, #tpu.memory_space<vmem>>, vector<4x1xf32>
    %c0_3 = arith.constant 0 : index
    %c3 = arith.constant 3 : index
    %3 = vector.load %arg7[%c0_3, %c3] : memref<16x8xf32, #tpu.memory_space<vmem>>, vector<4x1xf32>
    %c0_4 = arith.constant 0 : index
    %c4 = arith.constant 4 : index
    %4 = vector.load %arg7[%c0_4, %c4] : memref<16x8xf32, #tpu.memory_space<vmem>>, vector<16x1xf32>
    %c0_5 = arith.constant 0 : index
    %c5 = arith.constant 5 : index
    %5 = vector.load %arg7[%c0_5, %c5] : memref<16x8xf32, #tpu.memory_space<vmem>>, vector<16x1xf32>
    %c0_6 = arith.constant 0 : index
    %c6 = arith.constant 6 : index
    %6 = vector.load %arg7[%c0_6, %c6] : memref<16x8xf32, #tpu.memory_space<vmem>>, vector<16x1xf32>
    %c0_i32 = arith.constant 0 : i32
    %7 = arith.cmpi eq, %arg1, %c0_i32 : i32
    %8 = arith.extui %7 : i1 to i32
    %c0_i32_7 = arith.constant 0 : i32
    %9 = arith.cmpi ne, %8, %c0_i32_7 : i32
    scf.if %9 {
      %c0_18 = arith.constant 0 : index
      %c0_19 = arith.constant 0 : index
      %c0_20 = arith.constant 0 : index
      %35 = vector.load %arg2[%c0_18, %c0_19, %c0_20] : memref<1x16x256xf32, #tpu.memory_space<vmem>>, vector<1x16x256xf32>
      %36 = vector.shape_cast %35 : vector<1x16x256xf32> to vector<16x256xf32>
      %c0_21 = arith.constant 0 : index
      %c0_22 = arith.constant 0 : index
      %37 = vector.load %arg4[%c0_21, %c0_22] : memref<4x16xf32, #tpu.memory_space<vmem>>, vector<4x16xf32>
      %cst_23 = arith.constant dense<0.000000e+00> : vector<4x256xf32>
      %38 = tpu.matmul %37, %36, %cst_23 {dimension_numbers = #tpu.dot_dimension_numbers<[1], [0], [0], [1], [0, 0, 1, 1], [], []>} : vector<4x16xf32>, vector<16x256xf32>, vector<4x256xf32> -> vector<4x256xf32>
      %39 = vector.broadcast %0 : vector<4x1xf32> to vector<4x256xf32>
      %40 = arith.addf %38, %39 : vector<4x256xf32>
      %cst_24 = arith.constant 0.000000e+00 : f32
      %41 = vector.broadcast %cst_24 : f32 to vector<4x256xf32>
      %42 = arith.cmpf ogt, %40, %41 : vector<4x256xf32>
      %43 = vector.broadcast %1 : vector<4x1xf32> to vector<4x256xf32>
      %44 = arith.mulf %43, %40 : vector<4x256xf32>
      %45 = arith.select %42, %40, %44 : vector<4x256xi1>, vector<4x256xf32>
      %cst_25 = arith.constant 0.000000e+00 : f32
      %46 = vector.broadcast %cst_25 : f32 to vector<4x17xf32>
      %47 = tpu.concatenate %46, %45, %46 in 1 : vector<4x17xf32>, vector<4x256xf32>, vector<4x17xf32> -> vector<4x290xf32>
      %48 = vector.extract_strided_slice %47 {offsets = [0, 0], sizes = [4, 256], strides = [1, 1]} : vector<4x290xf32> to vector<4x256xf32>
      %c0_26 = arith.constant 0 : index
      %c0_27 = arith.constant 0 : index
      %49 = vector.load %arg3[%c0_26, %c0_27] : memref<3x256xf32, #tpu.memory_space<vmem>>, vector<1x256xf32>
      %50 = vector.broadcast %49 : vector<1x256xf32> to vector<4x256xf32>
      %51 = arith.mulf %48, %50 : vector<4x256xf32>
      %52 = vector.extract_strided_slice %47 {offsets = [0, 1], sizes = [4, 256], strides = [1, 1]} : vector<4x290xf32> to vector<4x256xf32>
      %c1_28 = arith.constant 1 : index
      %c0_29 = arith.constant 0 : index
      %53 = vector.load %arg3[%c1_28, %c0_29] : memref<3x256xf32, #tpu.memory_space<vmem>>, vector<1x256xf32>
      %54 = vector.broadcast %53 : vector<1x256xf32> to vector<4x256xf32>
      %55 = arith.mulf %52, %54 : vector<4x256xf32>
      %56 = vector.extract_strided_slice %47 {offsets = [0, 2], sizes = [4, 256], strides = [1, 1]} : vector<4x290xf32> to vector<4x256xf32>
      %c2_30 = arith.constant 2 : index
      %c0_31 = arith.constant 0 : index
      %57 = vector.load %arg3[%c2_30, %c0_31] : memref<3x256xf32, #tpu.memory_space<vmem>>, vector<1x256xf32>
      %58 = vector.broadcast %57 : vector<1x256xf32> to vector<4x256xf32>
      %59 = arith.mulf %56, %58 : vector<4x256xf32>
      %60 = vector.extract_strided_slice %47 {offsets = [0, 16], sizes = [4, 256], strides = [1, 1]} : vector<4x290xf32> to vector<4x256xf32>
      %c0_32 = arith.constant 0 : index
      %c0_33 = arith.constant 0 : index
      %61 = vector.load %arg3[%c0_32, %c0_33] : memref<3x256xf32, #tpu.memory_space<vmem>>, vector<1x256xf32>
      %62 = vector.broadcast %61 : vector<1x256xf32> to vector<4x256xf32>
      %63 = arith.mulf %60, %62 : vector<4x256xf32>
      %64 = vector.extract_strided_slice %47 {offsets = [0, 17], sizes = [4, 256], strides = [1, 1]} : vector<4x290xf32> to vector<4x256xf32>
      %c1_34 = arith.constant 1 : index
      %c0_35 = arith.constant 0 : index
      %65 = vector.load %arg3[%c1_34, %c0_35] : memref<3x256xf32, #tpu.memory_space<vmem>>, vector<1x256xf32>
      %66 = vector.broadcast %65 : vector<1x256xf32> to vector<4x256xf32>
      %67 = arith.mulf %64, %66 : vector<4x256xf32>
      %68 = vector.extract_strided_slice %47 {offsets = [0, 18], sizes = [4, 256], strides = [1, 1]} : vector<4x290xf32> to vector<4x256xf32>
      %c2_36 = arith.constant 2 : index
      %c0_37 = arith.constant 0 : index
      %69 = vector.load %arg3[%c2_36, %c0_37] : memref<3x256xf32, #tpu.memory_space<vmem>>, vector<1x256xf32>
      %70 = vector.broadcast %69 : vector<1x256xf32> to vector<4x256xf32>
      %71 = arith.mulf %68, %70 : vector<4x256xf32>
      %72 = vector.extract_strided_slice %47 {offsets = [0, 32], sizes = [4, 256], strides = [1, 1]} : vector<4x290xf32> to vector<4x256xf32>
      %c0_38 = arith.constant 0 : index
      %c0_39 = arith.constant 0 : index
      %73 = vector.load %arg3[%c0_38, %c0_39] : memref<3x256xf32, #tpu.memory_space<vmem>>, vector<1x256xf32>
      %74 = vector.broadcast %73 : vector<1x256xf32> to vector<4x256xf32>
      %75 = arith.mulf %72, %74 : vector<4x256xf32>
      %76 = vector.extract_strided_slice %47 {offsets = [0, 33], sizes = [4, 256], strides = [1, 1]} : vector<4x290xf32> to vector<4x256xf32>
      %c1_40 = arith.constant 1 : index
      %c0_41 = arith.constant 0 : index
      %77 = vector.load %arg3[%c1_40, %c0_41] : memref<3x256xf32, #tpu.memory_space<vmem>>, vector<1x256xf32>
      %78 = vector.broadcast %77 : vector<1x256xf32> to vector<4x256xf32>
      %79 = arith.mulf %76, %78 : vector<4x256xf32>
      %80 = vector.extract_strided_slice %47 {offsets = [0, 34], sizes = [4, 256], strides = [1, 1]} : vector<4x290xf32> to vector<4x256xf32>
      %c2_42 = arith.constant 2 : index
      %c0_43 = arith.constant 0 : index
      %81 = vector.load %arg3[%c2_42, %c0_43] : memref<3x256xf32, #tpu.memory_space<vmem>>, vector<1x256xf32>
      %82 = vector.broadcast %81 : vector<1x256xf32> to vector<4x256xf32>
      %83 = arith.mulf %80, %82 : vector<4x256xf32>
      %84 = tpu.concatenate %51, %55, %59, %63, %67, %71, %75, %79, %83 in 0 : vector<4x256xf32>, vector<4x256xf32>, vector<4x256xf32>, vector<4x256xf32>, vector<4x256xf32>, vector<4x256xf32>, vector<4x256xf32>, vector<4x256xf32>, vector<4x256xf32> -> vector<36x256xf32>
      %c0_44 = arith.constant 0 : index
      %c0_45 = arith.constant 0 : index
      %85 = vector.load %arg5[%c0_44, %c0_45] : memref<4x36xf32, #tpu.memory_space<vmem>>, vector<4x36xf32>
      %cst_46 = arith.constant dense<0.000000e+00> : vector<4x256xf32>
      %86 = tpu.matmul %85, %84, %cst_46 {dimension_numbers = #tpu.dot_dimension_numbers<[1], [0], [0], [1], [0, 0, 1, 1], [], []>} : vector<4x36xf32>, vector<36x256xf32>, vector<4x256xf32> -> vector<4x256xf32>
      %87 = vector.broadcast %2 : vector<4x1xf32> to vector<4x256xf32>
      %88 = arith.addf %86, %87 : vector<4x256xf32>
      %cst_47 = arith.constant 0.000000e+00 : f32
      %89 = vector.broadcast %cst_47 : f32 to vector<4x256xf32>
      %90 = arith.cmpf ogt, %88, %89 : vector<4x256xf32>
      %91 = vector.broadcast %3 : vector<4x1xf32> to vector<4x256xf32>
      %92 = arith.mulf %91, %88 : vector<4x256xf32>
      %93 = arith.select %90, %88, %92 : vector<4x256xi1>, vector<4x256xf32>
      %c0_48 = arith.constant 0 : index
      %c0_49 = arith.constant 0 : index
      %94 = vector.load %arg9[%c0_48, %c0_49] : memref<4x256xf32, #tpu.memory_space<vmem>>, vector<4x256xf32>
      tpu.vector_store %arg9[%c0_48, %c0_49], %93 {strides = array<i32>} : memref<4x256xf32, #tpu.memory_space<vmem>>, vector<4x256xf32>,
    } else {
    }
    %c128_i32 = arith.constant 128 : i32
    %10 = arith.muli %arg1, %c128_i32 : i32
    %11 = tpu.assume_multiple %10, 128 : i32
    %c0_8 = arith.constant 0 : index
    %12 = arith.index_cast %11 : i32 to index
    %13 = vector.load %arg9[%c0_8, %12] : memref<4x256xf32, #tpu.memory_space<vmem>>, vector<4x128xf32>
    %c0_9 = arith.constant 0 : index
    %c0_10 = arith.constant 0 : index
    %14 = vector.load %arg6[%c0_9, %c0_10] : memref<16x4xf32, #tpu.memory_space<vmem>>, vector<16x4xf32>
    %cst = arith.constant dense<0.000000e+00> : vector<16x128xf32>
    %15 = tpu.matmul %14, %13, %cst {dimension_numbers = #tpu.dot_dimension_numbers<[1], [0], [0], [1], [0, 0, 1, 1], [], []>} : vector<16x4xf32>, vector<4x128xf32>, vector<16x128xf32> -> vector<16x128xf32>
    %16 = vector.broadcast %4 : vector<16x1xf32> to vector<16x128xf32>
    %17 = arith.addf %15, %16 : vector<16x128xf32>
    %cst_11 = arith.constant 0.000000e+00 : f32
    %18 = vector.broadcast %cst_11 : f32 to vector<16x128xf32>
    %19 = arith.cmpf ogt, %17, %18 : vector<16x128xf32>
    %20 = vector.broadcast %5 : vector<16x1xf32> to vector<16x128xf32>
    %21 = arith.mulf %20, %17 : vector<16x128xf32>
    %22 = arith.select %19, %17, %21 : vector<16x128xi1>, vector<16x128xf32>
    %c0_12 = arith.constant 0 : index
    %c0_13 = arith.constant 0 : index
    %23 = arith.index_cast %11 : i32 to index
    %24 = vector.load %arg2[%c0_12, %c0_13, %23] : memref<1x16x256xf32, #tpu.memory_space<vmem>>, vector<1x16x128xf32>
    %25 = vector.shape_cast %24 : vector<1x16x128xf32> to vector<16x128xf32>
    %26 = arith.addf %25, %22 : vector<16x128xf32>
    %cst_14 = arith.constant 0.000000e+00 : f32
    %27 = vector.broadcast %cst_14 : f32 to vector<16x128xf32>
    %28 = arith.cmpf ogt, %26, %27 : vector<16x128xf32>
    %29 = vector.broadcast %6 : vector<16x1xf32> to vector<16x128xf32>
    %30 = arith.mulf %29, %26 : vector<16x128xf32>
    %31 = arith.select %28, %26, %30 : vector<16x128xi1>, vector<16x128xf32>
    %c0_15 = arith.constant 0 : index
    %c0_16 = arith.constant 0 : index
    %c0_17 = arith.constant 0 : index
    %32 = vector.load %arg8[%c0_15, %c0_16, %c0_17] : memref<1x16x128xf32, #tpu.memory_space<vmem>>, vector<1x16x128xf32>
    %33 = vector.shape_cast %32 : vector<1x16x128xf32> to vector<16x128xf32>
    %34 = vector.shape_cast %31 : vector<16x128xf32> to vector<1x16x128xf32>
    tpu.vector_store %arg8[%c0_15, %c0_16, %c0_17], %34 {strides = array<i32>} : memref<1x16x128xf32, #tpu.memory_space<vmem>>, vector<1x16x128xf32>,
    return
  }
  func.func @transform_0(%arg0: i32, %arg1: i32) -> (i32, i32, i32) {
    %c0_i32 = arith.constant 0 : i32
    %c0_i32_0 = arith.constant 0 : i32
    %c0_i32_1 = arith.constant 0 : i32
    return %arg0, %c0_i32, %c0_i32_0 : i32, i32, i32
  }
  func.func @transform_1(%arg0: i32, %arg1: i32) -> (i32, i32) {
    %c0_i32 = arith.constant 0 : i32
    %c0_i32_0 = arith.constant 0 : i32
    %c0_i32_1 = arith.constant 0 : i32
    return %c0_i32, %c0_i32_0 : i32, i32
  }
  func.func @transform_2(%arg0: i32, %arg1: i32) -> (i32, i32) {
    %c0_i32 = arith.constant 0 : i32
    %c0_i32_0 = arith.constant 0 : i32
    %c0_i32_1 = arith.constant 0 : i32
    return %c0_i32, %c0_i32_0 : i32, i32
  }
  func.func @transform_3(%arg0: i32, %arg1: i32) -> (i32, i32) {
    %c0_i32 = arith.constant 0 : i32
    %c0_i32_0 = arith.constant 0 : i32
    %c0_i32_1 = arith.constant 0 : i32
    return %c0_i32, %c0_i32_0 : i32, i32
  }
  func.func @transform_4(%arg0: i32, %arg1: i32) -> (i32, i32) {
    %c0_i32 = arith.constant 0 : i32
    %c0_i32_0 = arith.constant 0 : i32
    %c0_i32_1 = arith.constant 0 : i32
    return %c0_i32, %c0_i32_0 : i32, i32
  }
  func.func @transform_5(%arg0: i32, %arg1: i32) -> (i32, i32) {
    %c0_i32 = arith.constant 0 : i32
    %c0_i32_0 = arith.constant 0 : i32
    %c0_i32_1 = arith.constant 0 : i32
    return %c0_i32, %c0_i32_0 : i32, i32
  }
  func.func @transform_6(%arg0: i32, %arg1: i32) -> (i32, i32, i32) {
    %c0_i32 = arith.constant 0 : i32
    %c0_i32_0 = arith.constant 0 : i32
    return %arg0, %c0_i32, %arg1 : i32, i32, i32
  }
}

</mosaic_0001>

<bundles_post_ra>
// kernel: tpu_custom_call.1
= control target key start
LH: loop header
LB: loop body
LE: loop exit
PB: predicated region body
PF: predicated region fallthrough
CT: control target
= control target key end

     0   :  { %s1749_s0 = inlined_call_operand.hbm [shape: f32[2,16,256], index: 0, kind: input, shape index: {}]   ;;  %s1750_s1 = inlined_call_operand.vmem [shape: f32[3,256], index: 1, kind: input, shape index: {}]   ;;  %s1751_s2 = inlined_call_operand.vmem [shape: f32[4,16], index: 2, kind: input, shape index: {}]   ;;  %s1752_s3 = inlined_call_operand.vmem [shape: f32[4,36], index: 3, kind: input, shape index: {}]   ;;  %s1753_s4 = inlined_call_operand.vmem [shape: f32[16,4], index: 4, kind: input, shape index: {}]   ;;  %s1754_s5 = inlined_call_operand.vmem [shape: f32[16,8], index: 5, kind: input, shape index: {}]   ;;  %s1755_s6 = inlined_call_operand.hbm [shape: f32[2,16,256], index: 6, kind: output, shape index: {}]  }
   0x1   :  { %1763 = sst [smem:[#allocation14_spill]] %s1755_s6 }
   0x2   :  { %11 = vsyncpa [#allocation4], 0 }
   0x3   :  { %13 = vsyncpa [#allocation4 + $0x1], 0 }
   0x4   :  { %14 = vsyncpa [#allocation5], 0 }
   0x5   :  { %16 = vsyncpa [#allocation5 + $0x1], 0  ;;  %s1396_s21 = smov 0   ;;  %s1398_s22 = smov 0  }
   0x6   :  { %s1400_s23 = smov 0   ;;  %s1402_s24 = smov 0  }
   0x7   :  { %s1404_s25 = smov 0   ;;  %s1406_s26 = smov 0  }
   0x8   :  { %s1408_s27 = smov 0   ;;  %s1410_s28 = smov 0  }
   0x9   :  { %s1412_s29 = smov 0   ;;  %s1414_s30 = smov 0  }
   0xa   :  { %s1416_s7 = smov 0  }
   0xb LB: > { %1764 = sst [smem:[#allocation9_spill]] %s1320_s29  ;;  %s1004_s8 = sadd.s32 4294967295, %s1328_s7   ;;  %s1328_s7 = sphi %s1416_s7, %s22_s7   ;;  %s1324_s30 = sphi %s1414_s30, %s1780_s30   ;;  %s1320_s29 = sphi %s1412_s29, %s1779_s29   ;;  %s1316_s28 = sphi %s1410_s28, %s1778_s28   ;;  %s1312_s27 = sphi %s1408_s27, %s1777_s27   ;;  %s1308_s26 = sphi %s1406_s26, %s1786_s26   ;;  %s1304_s25 = sphi %s1404_s25, %s1785_s25   ;;  %s1300_s24 = sphi %s1402_s24, %s1784_s24   ;;  %s1296_s23 = sphi %s1400_s23, %s1783_s23   ;;  %s1292_s22 = sphi %s1398_s22, %s1782_s22   ;;  %s1288_s21 = sphi %s1396_s21, %s1781_s21  }
   0xc   : > { %1765 = sst [smem:[#allocation10_spill]] %s1324_s30  ;;  %s1005_s9 = sadd.s32 4294967294, %s1328_s7  }
   0xd   : > { %s31_s10 = sadd.s32 1, %s1320_s29  ;;  %s34_s11 = sadd.s32 1, %s1324_s30 }
   0xe   : > { %p32_p0 = scmp.ge.s32.totalorder %s31_s10, 2  ;;  %s41_s12 = sadd.s32 1, %s1308_s26 }
   0xf   : > { %p48_p1 = scmp.ne.s32.totalorder %s1308_s26, %s1304_s25  ;;  %p49_p2 = scmp.eq.s32.totalorder %s1328_s7, 0 }
  0x10   : > { %s1788_s10 = smov (%p32_p0, %s31_s10), 0  ;;  %s1790_s11 = smov (!%p32_p0, %s34_s11), %s1324_s30 }
  0x11   : > { %1766 = sst [smem:[#allocation11_spill]] %s1788_s10  ;;  %p1460_p3 = por %p49_p2, %p48_p1 }
  0x12   : > { %p54_p4 = scmp.ne.s32.totalorder %s1304_s25, %s1300_s24  ;;  %p36_p5 = scmp.ge.s32.totalorder %s1790_s11, 2 }
  0x13   : > { %p55_p6 = scmp.eq.s32.totalorder %s1004_s8, 0  ;;  %s170_s14 = ssub.s32 %s1320_s29, %s1788_s10 }
  0x14   : > { %s174_s15 = sadd.s32 1, %s1296_s23  ;;  %s1792_s11 = smov (%p36_p5, %s1790_s11), 0 }
  0x15   : > { %1768 = sst [smem:[#allocation12_spill]] %s1792_s11  ;;  %p1470_p7 = por %p55_p6, %p54_p4 }
  0x16   : > { %p184_p8 = scmp.ne.s32.totalorder %s1296_s23, %s1292_s22  ;;  %s38_s17 = ssub.s32 %s1324_s30, %s1792_s11 }
  0x17   : > { %p185_p9 = scmp.eq.s32.totalorder %s1004_s8, 3  ;;  %p39_p10 = scmp.eq.s32.totalorder %s38_s17, 0 }
  0x18   : > { %s171_s18 = sor.u32 %s170_s14, %s38_s17  ;;  %p190_p13 = scmp.ne.s32.totalorder %s1292_s22, %s1288_s21 }
  0x19   : > { %p172_p11 = scmp.eq.s32.totalorder %s171_s18, 0  ;;  %p1478_p12 = por %p185_p9, %p184_p8 }
  0x1a   : > { %s1483_s20 = scalar_select %p39_p10, %s1308_s26, %s41_s12  }
  0x1b   : > { %s1770_s19 = scalar_select %p1478_p12, 1, 0 }
  0x1c   : > { %s1486_s24 = scalar_select %p172_p11, %s1296_s23, %s174_s15  }
  0x1d   : > { %1771 = sst [smem:[#allocation13_spill]] %s1770_s19  ;;  %p191_p0 = scmp.eq.s32.totalorder %s1005_s9, 3 }
  0x1e   : > { %p1053_p1 = scmp.lt.s32.totalorder %s1328_s7, 4  ;;  %s226_s8 = sand.u32 1, %s1308_s26  }
  0x1f   : > { %p1491_p2 = por %p191_p0, %p190_p13  ;;  %s1008_s14 = sshll.u32 %s226_s8, 5 }
  0x20   : > { %s1032_s17 = sshll.u32 %s1324_s30, 9  ;;  %s230_s6 = scalar_lea.vmem [#allocation3], %s1008_s14 }
  0x21   : > { %s236_s29 = scalar_lea.hbm %s1749_s0, %s1032_s17  ;;  %s237_s19 = sshll.u32 %s230_s6, 4  ;;  %s238_s19 = int_to_ptr.vmem [resolvable:$true] %s237_s19 }
  0x22   : > { %p1502_p4 = pnand %p1053_p1, %p1460_p3  ;;  %p1011_p5 = scmp.ge.s32.totalorder %s1328_s7, 1 }
  0x23   : > { %s227_s9 = scalar_lea.sflag [#allocation4], %s226_s8  ;;  %s1193_s15 = scalar_lea.vmem %s238_s19, 512 }
  0x24   : > { %p1182_p6 = pneg %p1502_p4  ;;  %p1194_p8 = scmp.ne.s32.totalorder %s238_s19, %s1193_s15 }
  0x25   : > { %s1330_s30 = smov [#allocation3]  }
  0x26   : > { %p1196_p9 = pnand %p1194_p8, %p1182_p6  ;;  %s1198_s11 = sshll.u32 %s1330_s30, 4  ;;  %s1199_s11 = int_to_ptr.vmem [resolvable:$false] %s1198_s11 }
  0x27   : > { %s1200_s14 = scalar_lea.vmem %s1199_s11, 1024  ;;  %p1201_p11 = scmp.lt.s32.totalorder %s238_s19, %s1199_s11 }
  0x28   : > { %p1197_p10 = pneg %p1196_p9  ;;  %p1202_p13 = scmp.lt.s32.totalorder %s1200_s14, %s1193_s15 }
  0x2a   : > { %p1203_p0 = por %p1202_p13, %p1201_p11 }
  0x2c   : > { %p1204_p3 = pnand %p1203_p0, %p1197_p10 }
  0x2e   : > { %1207 = shalt.err (!%p1204_p3)
}
  0x2f   : > { %s1331_s6 = smov 256   ;;  %s1332_s13 = smov 16  }
  0x30   : > { %1048 = dma.hbm_to_vmem [thread:$0]  (!%p1502_p4), %s236_s29, 512, %s238_s19, %s227_s9, %s1331_s6, %s1331_s6, %s1332_s13  }
  0x31   : > { %p245_p1 = scmp.lt.s32.totalorder %s1328_s7, 5 }
  0x33   : > { %p246_p6 = pnand %p1011_p5, %p245_p1 }
  0x34   : > { %s251_s30 = sand.u32 (!%p246_p6), 1, %s1304_s25  }
  0x35   : > { %249 = sbr.rel (%p246_p6) target bundleno = 984 (0x3d8), region = 44  ;;  %s1012_s8 = sshll.u32 (!%p246_p6), %s251_s30, 5 }
  0x36   : > { %s252_s17 = scalar_lea.sflag (!%p246_p6), [#allocation4], %s251_s30  ;;  %s1515_s18 = scalar_lea.vmem (!%p246_p6), [#allocation3], %s1012_s8 }
  0x3a   : > { %1279 = dma.done.wait (%p1470_p7), %s252_s17, 512  }
  0x3b   : > { %1281 = vsyncadd (%p1470_p7), %s252_s17, 4294966784  ;;  %s281_s12 = sand.u32 1, %s1292_s22   ;;  %v1527_v0 = vld [vmem:[%s1754_s5] sm:$0xf]  ;;  %v1537_v2 = vld [vmem:[%s1754_s5 + $0x8] sm:$0xff]  ;;  %p1014_p7 = scmp.ne.s32.totalorder %s1312_s27, 0 }
  0x3c   : > { %s1013_s29 = sshll.u32 %s281_s12, 4  ;;  %v1532_v1 = vld [vmem:[%s1754_s5] sm:$0xff]  ;;  %s1336_s9 = smov (!%p1014_p7), 33  }
  0x3d   : > { %s1539_s16 = scalar_lea.vmem [#allocation6], %s1013_s29  ;;  %290 = sbr.rel (%p1014_p7) target bundleno = 755 (0x2f3), region = 52 }
  0x3e   : > { %s1337_s15 = smov (!%p1014_p7), 34   ;;  %s1338_s6 = smov (!%p1014_p7), 18  }
  0x3f   : > { %s1339_s13 = smov (!%p1014_p7), 32   ;;  %s1340_s30 = smov (!%p1014_p7), 16  }
  0x40   : > { %s1341_s8 = smov (!%p1014_p7), 17   ;;  %s1342_s17 = smov (!%p1014_p7), 1  }
  0x41   : > { %s1343_s29 = smov (!%p1014_p7), 2   ;;  %s1344_s19 = smov (!%p1014_p7), 94  }
  0x42   : > { %v294_v3 = vld [vmem:[%s1515_s18 + $0x18] sm:$0xff]  ;;  %v293_v4 = vld [vmem:[%s1515_s18 + $0x10] sm:$0xff]  ;;  %v292_v5 = vld [vmem:[%s1515_s18 + $0x8] sm:$0xff]  ;;  %v401_v6 = vlaneseq  ;;  %v1333_v8 = vmov 0.0   ;;  %vm301_vm0 = vcmask 130048   ;;  %v1334_v10 = vmov 0  }
  0x43   : > { %333 = vmatprep.subr.mxu0 %v294_v3  ;;  %v291_v7 = vld [vmem:[%s1515_s18] sm:$0xff]  ;;  %369 = vmatprep.mubr.f32.mxu0 %v1333_v8  ;;  %v295_v9 = vld [vmem:[%s1751_s2] sm:$0xf]  ;;  %v1335_v17 = vmov 1   ;;  %vm392_vm3 = vcmask 138240   ;;  %vm521_vm4 = vcmask 277504  }
  0x44   : > { %334 = vmatpush1.msra.mxu0 %v293_v4  ;;  %1172 = vset.pattern.permute.xlu0 %v1334_v10  ;;  %v402_v11 = vshrl.u32 %v401_v6, 7  ;;  %v1016_v12 = vld [vmem:[%s1750_s1 + $0x1] ss:$4 sm:$0x3]  ;;  %vm497_vm5 = vcmask 261120   ;;  %s1347_s11 = smov 126  }
  0x45   : > { %335 = vmatprep.subr.mxu0 %v292_v5  ;;  %298 = vperm.xlu0 %1172, %v1527_v0   ;;  %v1017_v15 = vld [vmem:[%s1750_s1 + $0x2] ss:$4 sm:$0x3]  ;;  %v399_v21 = vld [vmem:[%s1750_s1] ss:$4 sm:$0x3] }
  0x46   : > { %336 = vmatpush1.msra.mxu0 %v291_v7  ;;  %v403_v13 = vsub.s32 0, %v402_v11  ;;  %v407_v14 = vsub.s32 1, %v402_v11  ;;  %737 = vmatprep.mubr.f32.mxu1 %v1333_v8  ;;  %s1348_s14 = smov 95   ;;  %vm451_vm6 = vcmask 15360   ;;  %vm509_vm7 = vcmask 269312  }
  0x47   : > { %1015 = vmatmul.mubr.msk.f32.vlgmr.msra.gmra.mxu0 %vm301_vm0, %v295_v9  ;;  %vm485_vm8 = vcmask 146432   ;;  %vm428_vm9 = vcmask 7168   ;;  %vm648_vm10 = vcmask 769024   ;;  %vm651_vm11 = vcmask 1043456  }
  0x48   : > { %v419_v16 = vrot.slane %v1016_v12, %v403_v13  ;;  %v423_v18 = vrot.slane %v1016_v12, %v407_v14  ;;  %v442_v19 = vrot.slane %v1017_v15, %v403_v13  ;;  %v446_v20 = vrot.slane %v1017_v15, %v407_v14 }
  0x49   : > { %1173 = vset.pattern.permute.xlu0 %v1335_v17  ;;  %v1561_v22 = vrot.slane %v399_v21, %v403_v13  ;;  %v1564_v23 = vrot.slane %v399_v21, %v407_v14  ;;  %vm617_vm12 = vcmask 785408   ;;  %vm634_vm13 = vcmask 777216  }
  0x4a   : > { %379 = vperm.xlu0 %1173, %v1527_v0   ;;  %505 = vrot.lane.b32.xlu1 %v419_v16, %s1336_s9  ;;  %vm603_vm14 = vcmask 900096   ;;  %vm586_vm15 = vcmask 908288  }
  0x4e   : > { %507 = vrot.lane.b32.xlu0 %v423_v18, %s1336_s9  ;;  %517 = vrot.lane.b32.xlu1 %v442_v19, %s1337_s15  ;;  %s1345_s9 = smov 96  }
  0x52   : > { %519 = vrot.lane.b32.xlu0 %v446_v20, %s1337_s15  ;;  %481 = vrot.lane.b32.xlu1 %v442_v19, %s1338_s6  ;;  %s1346_s15 = smov 111  }
  0x56   : > { %483 = vrot.lane.b32.xlu0 %v446_v20, %s1338_s6  ;;  %493 = vrot.lane.b32.xlu1 %v1561_v22, %s1339_s13  ;;  %s1349_s6 = smov 110  }
  0x5a   : > { %495 = vrot.lane.b32.xlu0 %v1564_v23, %s1339_s13  ;;  %459 = vrot.lane.b32.xlu1 %v1561_v22, %s1340_s30  ;;  %s1350_s13 = smov 112  }
  0x5e   : > { %461 = vrot.lane.b32.xlu0 %v1564_v23, %s1340_s30  ;;  %470 = vrot.lane.b32.xlu1 %v419_v16, %s1341_s8  ;;  %s1353_s30 = smov 127  }
  0x62   : > { %472 = vrot.lane.b32.xlu0 %v423_v18, %s1341_s8 }
  0x66   : > { %426 = vrot.lane.b32.xlu0 %v423_v18, %s1342_s17 }
  0x6a   : > { %449 = vrot.lane.b32.xlu0 %v446_v20, %s1343_s29 }
  0xbc   : > { %v1569_v34 = vpop.permute.xlu1 %505 }
  0xc0   : > { %v299_v24 = vpop.permute.xlu0 %298  ;;  %v518_v35 = vpop.permute.xlu1 %517 }
  0xc4   : > { %v1571_v36 = vpop.permute.xlu1 %481 }
  0xc5   : > { %v380_v26 = vpop.permute.xlu0 %379 }
  0xc8   : > { %v494_v38 = vpop.permute.xlu1 %493 }
  0xc9   : > { %v1573_v37 = vpop.permute.xlu0 %507 }
  0xca   : > { %v510_v14 = vsel %vm509_vm7, %v1569_v34, %v1573_v37 }
  0xcc   : > { %v1575_v40 = vpop.permute.xlu1 %459 }
  0xcd   : > { %v520_v39 = vpop.permute.xlu0 %519 }
  0xce   : > { %v522_v49 = vsel %vm521_vm4, %v518_v35, %v520_v39 }
  0xd0   : > { %v471_v42 = vpop.permute.xlu1 %470 }
  0xd1   : > { %v1577_v41 = vpop.permute.xlu0 %483 }
  0xd5   : > { %v496_v43 = vpop.permute.xlu0 %495 }
  0xd6   : > { %v498_v55 = vsel %vm497_vm5, %v494_v38, %v496_v43 }
  0xd9   : > { %v1586_v50 = vpop.permute.xlu0 %461 }
  0xdd   : > { %v473_v58 = vpop.permute.xlu0 %472 }
  0xde   : > { %v474_v9 = vsel %vm392_vm3, %v471_v42, %v473_v58 }
  0xe1   : > { %v427_v63 = vpop.permute.xlu0 %426 }
  0xe5   : > { %v450_v8 = vpop.permute.xlu0 %449 }
 0x107   : > { %v371_v25 = vpop.f32.mrf.mxu0 }
 0x108   : > { %v372_v27 = vadd.f32 %v371_v25, %v299_v24 }
 0x109   : > { %v373_v28 = vpop.f32.mrf.mxu0 }
 0x10a   : > { %v382_v29 = vmul.f32 %v380_v26, %v372_v27  ;;  %v374_v30 = vadd.f32 %v373_v28, %v299_v24  ;;  %vm376_vm1 = vcmp.gt.f32.partialorder %v372_v27, 0.0 }
 0x10c   : > { %v383_v31 = vmul.f32 %v380_v26, %v374_v30  ;;  %v384_v32 = vsel %vm376_vm1, %v372_v27, %v382_v29  ;;  %vm377_vm2 = vcmp.gt.f32.partialorder %v374_v30, 0.0  ;;  %v463_v26 = vsel %vm301_vm0, %v1575_v40, %v1586_v50 }
 0x10d   : > { %388 = vrot.lane.b32.xlu1 %v384_v32, %s1341_s8  ;;  %vm572_vm0 = vcmask 916480   ;;  %vm555_vm1 = vcmask 1031168  }
 0x10e   : > { %v385_v33 = vsel %vm377_vm2, %v374_v30, %v383_v31  ;;  %vm541_vm2 = vcmask 1039360  }
 0x111   : > { %390 = vrot.lane.b32.xlu1 %v385_v33, %s1341_s8 }
 0x115   : > { %424 = vrot.lane.b32.xlu1 %v419_v16, %s1342_s17 }
 0x119   : > { %447 = vrot.lane.b32.xlu1 %v442_v19, %s1343_s29  ;;  %v486_v19 = vsel %vm485_vm8, %v1571_v36, %v1577_v41 }
 0x17f   : > { %v389_v44 = vpop.permute.xlu1 %388 }
 0x180   : > { %v1580_v45 = vsel %vm392_vm3, 0.0, %v389_v44 }
 0x181   : > { %v526_v46 = vmul.f32 %v518_v35, %v1580_v45  ;;  %v502_v47 = vmul.f32 %v494_v38, %v1580_v45  ;;  %v478_v52 = vmul.f32 %v471_v42, %v1580_v45  ;;  %v514_v57 = vmul.f32 %v1569_v34, %v1580_v45 }
 0x182   : > { %v490_v5 = vmul.f32 %v1571_v36, %v1580_v45  ;;  %v467_v13 = vmul.f32 %v1575_v40, %v1580_v45  ;;  %v1351_v36 = vmov 2  }
 0x183   : > { %642 = vrot.lane.b32.xlu1 %v526_v46, %s1344_s19  ;;  %611 = vrot.lane.b32.xlu0 %v502_v47, %s1345_s9  ;;  %v391_v48 = vpop.permute.xlu1 %390  ;;  %v625_v62 = vrot.slane %v514_v57, 4 }
 0x184   : > { %v1589_v51 = vsel %vm392_vm3, %v389_v44, %v391_v48  ;;  %v398_v61 = vsel %vm392_vm3, %v391_v48, 0.0  ;;  %v594_v7 = vrot.slane %v490_v5, 4  ;;  %v563_v17 = vrot.slane %v467_v13, 4  ;;  %1174 = vset.pattern.permute.xlu1 %v1351_v36 }
 0x185   : > { %v527_v53 = vmul.f32 %v522_v49, %v1589_v51  ;;  %v503_v56 = vmul.f32 %v498_v55, %v1589_v51  ;;  %v528_v3 = vmul.f32 %v520_v39, %v398_v61  ;;  %v480_v4 = vmul.f32 %v473_v58, %v398_v61 }
 0x186   : > { %v504_v6 = vmul.f32 %v496_v43, %v398_v61  ;;  %v479_v10 = vmul.f32 %v474_v9, %v1589_v51  ;;  %v458_v11 = vmul.f32 %v450_v8, %v398_v61  ;;  %v516_v16 = vmul.f32 %v1573_v37, %v398_v61 }
 0x187   : > { %580 = vrot.lane.b32.xlu0 %v478_v52, %s1346_s15  ;;  %644 = vrot.lane.b32.xlu1 %v527_v53, %s1344_s19  ;;  %v1595_v54 = vpop.permute.xlu1 %424  ;;  %v515_v18 = vmul.f32 %v510_v14, %v1589_v51  ;;  %v491_v21 = vmul.f32 %v486_v19, %v1589_v51  ;;  %v492_v25 = vmul.f32 %v1577_v41, %v398_v61  ;;  %v1352_v37 = vmov 3  }
 0x188   : > { %v627_v20 = vrot.slane %v516_v16, 4  ;;  %v468_v28 = vmul.f32 %v463_v26, %v1589_v51  ;;  %v429_v29 = vsel %vm428_vm9, %v1595_v54, %v427_v63  ;;  %v469_v31 = vmul.f32 %v1586_v50, %v398_v61  ;;  %1175 = vset.pattern.permute.xlu0 %v1352_v37 }
 0x189   : > { %v626_v24 = vrot.slane %v515_v18, 4  ;;  %v595_v27 = vrot.slane %v491_v21, 4  ;;  %v596_v30 = vrot.slane %v492_v25, 4  ;;  %v434_v32 = vmul.f32 %v429_v29, %v1589_v51 }
 0x18a   : > { %v564_v33 = vrot.slane %v468_v28, 4  ;;  %v565_v34 = vrot.slane %v469_v31, 4  ;;  %v435_v35 = vmul.f32 %v427_v63, %v398_v61  ;;  %v433_v38 = vmul.f32 %v1595_v54, %v1580_v45 }
 0x18b   : > { %613 = vrot.lane.b32.xlu1 %v503_v56, %s1345_s9  ;;  %v448_v59 = vpop.permute.xlu1 %447  ;;  %v533_v39 = vrot.slane %v434_v32, 4  ;;  %v411_v31 = vmul.f32 %v1561_v22, %v1580_v45  ;;  %vm665_vm3 = vcmask 293888  }
 0x18c   : > { %v456_v60 = vmul.f32 %v448_v59, %v1580_v45  ;;  %v452_v12 = vsel %vm451_vm6, %v448_v59, %v450_v8  ;;  %v534_v40 = vrot.slane %v435_v35, 4  ;;  %v532_v41 = vrot.slane %v433_v38, 4 }
 0x18d   : > { %v457_v15 = vmul.f32 %v452_v12, %v1589_v51 }
 0x18e   : > { %549 = vrot.lane.b32.xlu0 %v456_v60, %s1347_s11 }
 0x18f   : > { %628 = vrot.lane.b32.xlu1 %v625_v62, %s1348_s14 }
 0x192   : > { %646 = vrot.lane.b32.xlu0 %v528_v3, %s1344_s19 }
 0x193   : > { %584 = vrot.lane.b32.xlu1 %v480_v4, %s1346_s15 }
 0x196   : > { %615 = vrot.lane.b32.xlu0 %v504_v6, %s1345_s9 }
 0x197   : > { %597 = vrot.lane.b32.xlu1 %v594_v7, %s1349_s6 }
 0x19a   : > { %582 = vrot.lane.b32.xlu0 %v479_v10, %s1346_s15 }
 0x19b   : > { %553 = vrot.lane.b32.xlu1 %v458_v11, %s1347_s11 }
 0x19e   : > { %551 = vrot.lane.b32.xlu0 %v457_v15, %s1347_s11 }
 0x19f   : > { %566 = vrot.lane.b32.xlu1 %v563_v17, %s1350_s13 }
 0x1a2   : > { %632 = vrot.lane.b32.xlu0 %v627_v20, %s1348_s14 }
 0x1a3   : > { %630 = vrot.lane.b32.xlu1 %v626_v24, %s1348_s14 }
 0x1a6   : > { %599 = vrot.lane.b32.xlu0 %v595_v27, %s1349_s6  ;;  %v412_v27 = vmul.f32 %v1564_v23, %v1589_v51 }
 0x1a7   : > { %601 = vrot.lane.b32.xlu1 %v596_v30, %s1349_s6 }
 0x1aa   : > { %568 = vrot.lane.b32.xlu0 %v564_v33, %s1350_s13  ;;  %v660_v33 = vld [vmem:[%s1752_s3] sm:$0xf] }
 0x1ab   : > { %570 = vrot.lane.b32.xlu1 %v565_v34, %s1350_s13 }
 0x1ae   : > { %537 = vrot.lane.b32.xlu0 %v533_v39, %s1353_s30 }
 0x1af   : > { %539 = vrot.lane.b32.xlu1 %v534_v40, %s1353_s30 }
 0x1b2   : > { %535 = vrot.lane.b32.xlu0 %v532_v41, %s1353_s30 }
 0x1b3   : > { %662 = vperm.xlu1 %1174, %v1527_v0  }
 0x1b6   : > { %747 = vperm.xlu0 %1175, %v1527_v0  }
 0x1f5   : > { %v643_v42 = vpop.permute.xlu1 %642  ;;  %v612_v43 = vpop.permute.xlu0 %611 }
 0x1f9   : > { %v645_v44 = vpop.permute.xlu1 %644  ;;  %v581_v46 = vpop.permute.xlu0 %580 }
 0x1fa   : > { %v649_v54 = vsel %vm648_vm10, %v643_v42, %v645_v44 }
 0x1fd   : > { %v614_v47 = vpop.permute.xlu1 %613 }
 0x1fe   : > { %v618_v62 = vsel %vm617_vm12, %v612_v43, %v614_v47 }
 0x200   : > { %v550_v48 = vpop.permute.xlu0 %549 }
 0x201   : > { %v629_v49 = vpop.permute.xlu1 %628 }
 0x204   : > { %v647_v50 = vpop.permute.xlu0 %646 }
 0x205   : > { %v585_v52 = vpop.permute.xlu1 %584  ;;  %v650_v53 = vsel %vm648_vm10, %v645_v44, %v647_v50 }
 0x206   : > { %1018 = vmatprep.subr.msk.mxu1 %vm651_vm11, %v650_v53 }
 0x207   : > { %1019 = vmatpush1.msk.msra.mxu1 %vm651_vm11, %v649_v54 }
 0x208   : > { %v616_v55 = vpop.permute.xlu0 %615 }
 0x209   : > { %v598_v56 = vpop.permute.xlu1 %597  ;;  %v619_v63 = vsel %vm617_vm12, %v614_v47, %v616_v55 }
 0x20c   : > { %v583_v0 = vpop.permute.xlu0 %582 }
 0x20d   : > { %v554_v57 = vpop.permute.xlu1 %553  ;;  %v588_v10 = vsel %vm586_vm15, %v583_v0, %v585_v52  ;;  %v587_v12 = vsel %vm586_vm15, %v581_v46, %v583_v0 }
 0x210   : > { %v552_v58 = vpop.permute.xlu0 %551 }
 0x211   : > { %v567_v59 = vpop.permute.xlu1 %566  ;;  %v557_v18 = vsel %vm555_vm1, %v552_v58, %v554_v57  ;;  %v556_v20 = vsel %vm555_vm1, %v550_v48, %v552_v58 }
 0x214   : > { %v633_v60 = vpop.permute.xlu0 %632 }
 0x215   : > { %v631_v61 = vpop.permute.xlu1 %630 }
 0x216   : > { %v635_v3 = vsel %vm634_vm13, %v629_v49, %v631_v61  ;;  %v636_v4 = vsel %vm634_vm13, %v631_v61, %v633_v60 }
 0x217   : > { %v659_v5 = vsel %vm651_vm11, %v619_v63, %v636_v4  ;;  %v658_v6 = vsel %vm651_vm11, %v618_v62, %v635_v3 }
 0x218   : > { %v600_v7 = vpop.permute.xlu0 %599  ;;  %697 = vmatprep.subr.mxu1 %v659_v5 }
 0x219   : > { %v604_v8 = vsel %vm603_vm14, %v598_v56, %v600_v7  ;;  %698 = vmatpush1.msra.mxu1 %v658_v6  ;;  %v602_v9 = vpop.permute.xlu1 %601 }
 0x21a   : > { %v605_v11 = vsel %vm603_vm14, %v600_v7, %v602_v9  ;;  %v656_v15 = vsel %vm651_vm11, %v587_v12, %v604_v8 }
 0x21b   : > { %v657_v13 = vsel %vm651_vm11, %v588_v10, %v605_v11 }
 0x21c   : > { %v569_v14 = vpop.permute.xlu0 %568  ;;  %699 = vmatprep.subr.mxu1 %v657_v13 }
 0x21d   : > { %v573_v16 = vsel %vm572_vm0, %v567_v59, %v569_v14  ;;  %700 = vmatpush1.msra.mxu1 %v656_v15  ;;  %v571_v17 = vpop.permute.xlu1 %570 }
 0x21e   : > { %v574_v19 = vsel %vm572_vm0, %v569_v14, %v571_v17  ;;  %v654_v25 = vsel %vm651_vm11, %v556_v20, %v573_v16 }
 0x21f   : > { %v655_v21 = vsel %vm651_vm11, %v557_v18, %v574_v19 }
 0x220   : > { %v538_v24 = vpop.permute.xlu0 %537  ;;  %701 = vmatprep.subr.mxu1 %v655_v21 }
 0x221   : > { %702 = vmatpush1.msra.mxu1 %v654_v25  ;;  %v540_v26 = vpop.permute.xlu1 %539 }
 0x222   : > { %v543_v28 = vsel %vm541_vm2, %v538_v24, %v540_v26 }
 0x223   : > { %v653_v29 = vsel %vm651_vm11, %v412_v27, %v543_v28 }
 0x224   : > { %v536_v30 = vpop.permute.xlu0 %535  ;;  %703 = vmatprep.subr.mxu1 %v653_v29 }
 0x225   : > { %v542_v32 = vsel %vm541_vm2, %v536_v30, %v538_v24 }
 0x226   : > { %v652_v34 = vsel %vm651_vm11, %v411_v31, %v542_v32 }
 0x227   : > { %704 = vmatpush1.msra.mxu1 %v652_v34 }
 0x228   : > { %1020 = vmatmul.mubr.msk.f32.vlgmr.msra.gmra.mxu1 %vm665_vm3, %v660_v33 }
 0x22e   : > { %v663_v35 = vpop.permute.xlu1 %662 }
 0x231   : > { %v748_v51 = vpop.permute.xlu0 %747 }
 0x2e8   : > { %v739_v23 = vpop.f32.mrf.mxu1 }
 0x2e9   : > { %v740_v36 = vadd.f32 %v739_v23, %v663_v35 }
 0x2ea   : > { %v741_v37 = vpop.f32.mrf.mxu1 }
 0x2eb   : > { %v750_v38 = vmul.f32 %v748_v51, %v740_v36  ;;  %v742_v39 = vadd.f32 %v741_v37, %v663_v35  ;;  %vm744_vm4 = vcmp.gt.f32.partialorder %v740_v36, 0.0 }
 0x2ed   : > { %vm745_vm5 = vcmp.gt.f32.partialorder %v742_v39, 0.0  ;;  %v751_v22 = vmul.f32 %v748_v51, %v742_v39  ;;  %v752_v45 = vsel %vm744_vm4, %v740_v36, %v750_v38 }
 0x2ef   : > { %v753_v40 = vsel %vm745_vm5, %v742_v39, %v751_v22 }
 0x2f0   : > { %v756_v41 = vcombine.low %v752_v45, %v753_v40 }
 0x2f2   : > { %758 = vst [vmem:[#allocation2] sm:$0xff] %v756_v41 }
 0x2f3 PF: > { %s1021_s29 = sshll.u32 %s1312_s27, 7  ;;  %v765_v42 = vld [vmem:[%s1753_s4] sm:$0xff]  ;;  %vm777_vm6 = vcmask 31744   ;;  %v1354_v43 = vmov 4   ;;  %vm784_vm7 = vcmask 1043456   ;;  %v1355_v44 = vmov 5  }
 0x2f4   : > { %s760_s15 = sshra.s32 %s1021_s29, 7  ;;  %1038 = vmatprep.mubr.msk.f32.mxu0 %vm777_vm6, %v765_v42  ;;  %1176 = vset.pattern.permute.xlu0 %v1354_v43  ;;  %v766_v47 = vld [vmem:[%s1753_s4 + $0x8] sm:$0xff]  ;;  %v1356_v48 = vmov 6   ;;  %s1028_s17 = sshll.u32 %s1316_s28, 2 }
 0x2f5   : > { %s1022_s11 = sshll.u32 %s760_s15, 2  ;;  %769 = vperm.xlu0 %1176, %v1532_v1   ;;  %1177 = vset.pattern.permute.xlu1 %v1355_v44  ;;  %s1026_s30 = sshll.u32 %s760_s15, 3 }
 0x2f6   : > { %866 = vperm.xlu1 %1177, %v1532_v1   ;;  %s763_s14 = scalar_lea.vmem [#allocation2], %s1022_s11  ;;  %s878_s8 = scalar_lea.vmem %s1515_s18, %s1026_s30 [#allocation3] }
 0x2f7   : > { %v880_v0 = vld [vmem:[%s878_s8 + $0x10] sm:$0xff]  ;;  %s911_s29 = sadd.s32 %s1312_s27, %s1028_s17  ;;  %s914_s19 = sshll.u32 %s1539_s16, 4  ;;  %s1683_s19 = int_to_ptr.vmem [resolvable:$true] %s914_s19 }
 0x2f8   : > { %s1029_s18 = sshll.u32 %s911_s29, 7  ;;  %s1775_s27 = sld [smem:[#allocation14_spill]] }
 0x2f9   : > { %v764_v46 = vld [vmem:[%s763_s14] sm:$0xf]  ;;  %774 = vperm.xlu0 %1176, %v1537_v2   ;;  %s1689_s6 = scalar_lea.sflag [#allocation5], %s281_s12  ;;  %s1208_s13 = scalar_lea.vmem %s1683_s19, 256 }
 0x2fa   : > { %1036 = vmatprep.subr.msk.mxu0 %vm784_vm7, %v764_v46  ;;  %870 = vperm.xlu1 %1177, %v1537_v2   ;;  %p1209_p4 = scmp.ne.s32.totalorder %s1683_s19, %s1208_s13  ;;  %s1357_s30 = smov [#allocation6]  }
 0x2fb   : > { %1037 = vmatpush3.msk.msra.mxu0 %vm784_vm7, %v764_v46 }
 0x2fc   : > { %1039 = vmatmul.mubr.msk.f32.vlgmr.msra.gmra.mxu0 %vm777_vm6, %v766_v47  ;;  %p1210_p5 = pnand %p1209_p4, %p1478_p12 }
 0x2fd   : > { %1178 = vset.pattern.permute.xlu0 %v1356_v48 }
 0x2fe   : > { %1179 = vset.pattern.permute.xlu1 %v1356_v48  ;;  %886 = vperm.xlu0 %1178, %v1532_v1   ;;  %v879_v1 = vld [vmem:[%s878_s8] sm:$0xff]  ;;  %s1776_s11 = smov %s1775_s27  ;;  %s1681_s14 = scalar_lea.hbm %s1775_s27, %s1029_s18 }
 0x2ff   : > { %890 = vperm.xlu1 %1179, %v1537_v2   ;;  %p1211_p8 = pneg %p1210_p5  ;;  %s1212_s8 = sshll.u32 %s1357_s30, 4  ;;  %s1213_s8 = int_to_ptr.vmem [resolvable:$false] %s1212_s8 }
 0x300   : > { %s1214_s17 = scalar_lea.vmem %s1213_s8, 512  ;;  %p1215_p9 = scmp.lt.s32.totalorder %s1683_s19, %s1213_s8 }
 0x301   : > { %p1216_p10 = scmp.lt.s32.totalorder %s1214_s17, %s1208_s13 }
 0x303   : > { %p1217_p11 = por %p1216_p10, %p1215_p9 }
 0x305   : > { %p1218_p13 = pnand %p1217_p11, %p1211_p8 }
 0x370   : > { %v770_v49 = vpop.permute.xlu0 %769 }
 0x371   : > { %v867_v50 = vpop.permute.xlu1 %866 }
 0x374   : > { %v775_v52 = vpop.permute.xlu0 %774 }
 0x375   : > { %v871_v54 = vpop.permute.xlu1 %870 }
 0x379   : > { %v887_v63 = vpop.permute.xlu0 %886 }
 0x37a   : > { %v891_v60 = vpop.permute.xlu1 %890 }
 0x3bc   : > { %v1040_v53 = vpop.f32.mrf.mxu0 }
 0x3bd   : > { %v860_v55 = vadd.f32 %v1040_v53, %v775_v52 }
 0x3be   : > { %v854_v56 = vpop.f32.mrf.mxu0 }
 0x3bf   : > { %vm864_vm8 = vcmp.gt.f32.partialorder %v860_v55, 0.0  ;;  %v874_v57 = vmul.f32 %v871_v54, %v860_v55  ;;  %v855_v58 = vadd.f32 %v854_v56, %v770_v49 }
 0x3c1   : > { %v876_v59 = vsel %vm864_vm8, %v860_v55, %v874_v57  ;;  %vm863_vm9 = vcmp.gt.f32.partialorder %v855_v58, 0.0  ;;  %v873_v2 = vmul.f32 %v867_v50, %v855_v58 }
 0x3c2   : > { %v882_v61 = vadd.f32 %v880_v0, %v876_v59 }
 0x3c3   : > { %v875_v62 = vsel %vm863_vm9, %v855_v58, %v873_v2 }
 0x3c4   : > { %vm884_vm10 = vcmp.gt.f32.partialorder %v882_v61, 0.0  ;;  %v894_v3 = vmul.f32 %v891_v60, %v882_v61  ;;  %v881_v4 = vadd.f32 %v879_v1, %v875_v62 }
 0x3c6   : > { %v896_v5 = vsel %vm884_vm10, %v882_v61, %v894_v3  ;;  %vm883_vm11 = vcmp.gt.f32.partialorder %v881_v4, 0.0  ;;  %v893_v6 = vmul.f32 %v887_v63, %v881_v4 }
 0x3c7   : > { %898 = vst [vmem:[%s1539_s16 + $0x8] sm:$0xff] %v896_v5 }
 0x3c8   : > { %v895_v7 = vsel %vm883_vm11, %v881_v4, %v893_v6 }
 0x3c9   : > { %897 = vst [vmem:[%s1539_s16] sm:$0xff] %v895_v7 }
 0x3ca   : > { %1221 = shalt.err (!%p1218_p13)
}
 0x3cb   : > { %s1222_s12 = scalar_lea.hbm %s1681_s14, 256  ;;  %s1226_s18 = scalar_lea.hbm %s1776_s11, 1024 }
 0x3cc   : > { %p1223_p0 = scmp.ne.s32.totalorder %s1681_s14, %s1222_s12  ;;  %p1227_p6 = scmp.lt.s32.totalorder %s1681_s14, %s1776_s11 }
 0x3cd   : > { %p1228_p7 = scmp.lt.s32.totalorder %s1226_s18, %s1222_s12 }
 0x3ce   : > { %p1224_p3 = pnand %p1223_p0, %p1478_p12 }
 0x3cf   : > { %p1229_p4 = por %p1228_p7, %p1227_p6 }
 0x3d0   : > { %p1225_p1 = pneg %p1224_p3 }
 0x3d2   : > { %p1230_p5 = pnand %p1229_p4, %p1225_p1 }
 0x3d4   : > { %1233 = shalt.err (!%p1230_p5)
}
 0x3d5   : > { %s1358_s27 = smov 128   ;;  %s1359_s13 = smov 256  }
 0x3d6   : > { %s1360_s30 = smov 8  }
 0x3d7   : > { %1043 = dma.vmem_to_hbm [thread:$0]  (%p1478_p12), %s1683_s19, 256, %s1681_s14, %s1689_s6, %s1358_s27, %s1359_s13, %s1360_s30  }
 0x3d8 PF: > { %p1054_p8 = scmp.ge.s32.totalorder %s1328_s7, 2  ;;  %s929_s8 = sand.u32 1, %s1288_s21  }
 0x3d9   : > { %s930_s17 = scalar_lea.sflag [#allocation5], %s929_s8 }
 0x3da   : > { %p1050_p9 = pnand %p1054_p8, %p1491_p2 }
 0x3dc   : > { %p1051_p10 = pneg %p1050_p9 }
 0x3de   : > { %1283 = dma.done.wait (%p1051_p10), %s930_s17, 256  }
 0x3df   : > { %1285 = vsyncadd (%p1051_p10), %s930_s17, 4294967040  ;;  %s22_s7 = sadd.s32 1, %s1328_s7   ;;  %s1777_s27 = sld [smem:[#allocation9_spill]] }
 0x3e0   : > { %p19_p11 = scmp.ge.s32.totalorder %s22_s7, 6   ;;  %s1778_s28 = sld [smem:[#allocation10_spill]] }
 0x3e1   : > { %s1779_s29 = sld [smem:[#allocation11_spill]]  ;;  %s1781_s21 = smov %s1292_s22 }
 0x3e2   : > { %s1780_s30 = sld [smem:[#allocation12_spill]]  ;;  %s1782_s22 = smov %s1296_s23 }
 0x3e3   : > { %s1783_s23 = smov %s1486_s24  ;;  %s1784_s24 = smov %s1304_s25 }
 0x3e4   : > { %s1785_s25 = smov %s1308_s26  ;;  %s1786_s26 = smov %s1483_s20 }
 0x3e5   :  { %21 = sbr.rel (!%p19_p11) target bundleno = 11 (0xb), region = 97 }
 0x3ea   :  { %935 = vsyncpa [#allocation4], 1 }
 0x3eb   :  { %937 = vsyncpa [#allocation4 + $0x1], 1 }
 0x3ec   :  { %938 = vsyncpa [#allocation5], 1 }
 0x3ed   :  { %940 = vsyncpa [#allocation5 + $0x1], 1 }

</bundles_post_ra>
